<compile_context>
chip_gen: v5e
topology: v5e:2x2
jax: 0.10.0
libtpu: 0.0.40
codegen_flags: <defaults>
</compile_context>

<pallas_src>
import jax
import jax.numpy as jnp
from jax.experimental import pallas as pl
from jax.experimental.pallas import tpu as pltpu


# ----------------------------------------------------------------------------
# Path 1: zero-copy identity (output aliases the input buffer; no DMA issued).
# ----------------------------------------------------------------------------
def _identity_alias_kernel(x_hbm_ref, o_hbm_ref):
    # x_hbm_ref and o_hbm_ref refer to the SAME HBM buffer
    # (input_output_aliases={0: 0}); there is nothing to move or compute.
    del x_hbm_ref, o_hbm_ref


def identity(x: jax.Array) -> jax.Array:
    """Pallas identity whose output aliases the input HBM buffer.

    If a Pallas kernel were not strictly required, the optimal implementation
    is simply `return x`.  When the kernel is mandated, call this through
    `identity_donate` (or jit it with donate_argnums=0 at the call site) so
    XLA does not insert a defensive copy to keep the still-live input intact.
    """
    return pl.pallas_call(
        _identity_alias_kernel,
        out_shape=jax.ShapeDtypeStruct(x.shape, x.dtype),
        in_specs=[pl.BlockSpec(memory_space=pl.ANY)],
        out_specs=pl.BlockSpec(memory_space=pl.ANY),
        input_output_aliases={0: 0},
    )(x)


# Donating entry point: with the input buffer donated, the aliased custom call
# really is zero bytes of HBM traffic (no defensive pre-copy).
identity_donate = jax.jit(identity, donate_argnums=0)


# ----------------------------------------------------------------------------
# Path 2: fresh-buffer identity via direct HBM->HBM DMA (no VMEM round trip).
# ----------------------------------------------------------------------------
_MAX_DMA_CHUNKS = 4
_CHUNK_THRESHOLD_BYTES = 4 * 1024 * 1024  # chunk DMAs only for >= 4 MiB copies


def _chunk_bounds(n_rows: int, chunks: int):
    """Static (start, size) slices along the leading axis, roughly equal."""
    chunks = max(1, min(chunks, n_rows))
    base, rem = divmod(n_rows, chunks)
    bounds, start = [], 0
    for i in range(chunks):
        size = base + (1 if i < rem else 0)
        if size == 0:
            continue
        bounds.append((start, size))
        start += size
    return bounds


def _make_dma_copy_kernel(bounds):
    """HBM->HBM memcpy: start all chunked DMAs, then wait on all of them."""

    def kernel(x_hbm_ref, o_hbm_ref, sem):
        copies = []
        for i, (start, size) in enumerate(bounds):
            cp = pltpu.make_async_copy(
                x_hbm_ref.at[pl.ds(start, size)],
                o_hbm_ref.at[pl.ds(start, size)],
                sem.at[i],
            )
            cp.start()
            copies.append(cp)
        for cp in copies:
            cp.wait()

    return kernel


def identity_copy(x: jax.Array, *, chunks: int | None = None) -> jax.Array:
    """Pallas identity that materializes a fresh output buffer.

    Implemented as a direct HBM->HBM async copy (memory_space=pl.ANY on both
    sides): a handful of large DMA descriptors hit the HBM roofline on
    v5e/v6e/v7x with no per-grid-step overhead, no VMEM usage, and no shape /
    alignment constraints.
    """
    orig_shape = x.shape
    dtype = x.dtype
    itemsize = jnp.dtype(dtype).itemsize

    # Work on an array with at least one leading axis (scalars -> (1,)).
    work = x if x.ndim >= 1 else x.reshape((1,))
    work_shape = work.shape
    nbytes = work.size * itemsize

    if chunks is None:
        if nbytes >= _CHUNK_THRESHOLD_BYTES:
            chunks = min(_MAX_DMA_CHUNKS, work_shape[0])
        else:
            chunks = 1
    bounds = _chunk_bounds(work_shape[0], chunks)

    out = pl.pallas_call(
        _make_dma_copy_kernel(bounds),
        out_shape=jax.ShapeDtypeStruct(work_shape, dtype),
        in_specs=[pl.BlockSpec(memory_space=pl.ANY)],
        out_specs=pl.BlockSpec(memory_space=pl.ANY),
        scratch_shapes=[pltpu.SemaphoreType.DMA((len(bounds),))],
        cost_estimate=pl.CostEstimate(
            flops=0, transcendentals=0, bytes_accessed=2 * nbytes),
    )(work)

    return out.reshape(orig_shape)


if __name__ == "__main__":
    key = jax.random.PRNGKey(0)
    # Small shape consistent with a typical feature tensor (NCHW-like).
    x = jax.random.normal(key, (2, 4, 16, 16), dtype=jnp.float32)

    # Aliased identity (input still live here -> XLA may insert a defensive
    # copy, but values/shape/dtype are exact).
    y = identity(x)
    jax.block_until_ready(y)
    assert y.shape == x.shape and y.dtype == x.dtype
    assert bool(jnp.all(y == x))

    # Truly zero-copy path: donate a fresh buffer holding the same values.
    x_donated = jnp.copy(x)
    y_d = identity_donate(x_donated)
    jax.block_until_ready(y_d)
    assert y_d.shape == x.shape and y_d.dtype == x.dtype
    assert bool(jnp.all(y_d == x))

    # Fresh-buffer identity via single HBM->HBM DMA.
    y2 = identity_copy(x)
    jax.block_until_ready(y2)
    assert y2.shape == x.shape and y2.dtype == x.dtype
    assert bool(jnp.all(y2 == x))

    # Exercise the chunked-DMA kernel path explicitly (2 chunks).
    y2c = identity_copy(x, chunks=2)
    jax.block_until_ready(y2c)
    assert bool(jnp.all(y2c == x))

    # Odd-sized / unaligned tensor: the DMA path has no shape constraints.
    x3 = jax.random.normal(jax.random.PRNGKey(1), (3, 5, 7), dtype=jnp.float32)
    y3 = identity_copy(x3)
    jax.block_until_ready(y3)
    assert bool(jnp.all(y3 == x3))

    print("KERNEL_OK")
</pallas_src>

<mosaic_0001>
module attributes {stable_mosaic.version = 11 : i64} {
  func.func @_identity_alias_kernel(%arg0: memref<2x4x16x16xf32, #tpu.memory_space<any>>, %arg1: memref<2x4x16x16xf32, #tpu.memory_space<any>>) attributes {dimension_semantics = [], scalar_prefetch = 0 : i64, scratch_operands = 0 : i64, tpu.core_type = #tpu.core_type<tc>} {
    return
  }
}

</mosaic_0001>

<bundles_post_ra>
// kernel: tpu_custom_call.1
= control target key start
LH: loop header
LB: loop body
LE: loop exit
PB: predicated region body
PF: predicated region fallthrough
CT: control target
= control target key end

     0   :  { %s16_s0 = inlined_call_operand.hbm [shape: f32[2,4,16,16], index: 0, kind: input, shape index: {}, may-alias: {0,1}]   ;;  %s17_s1 = inlined_call_operand.hbm [shape: f32[2,4,16,16], index: 1, kind: output, shape index: {}, may-alias: {0,1}]  }

</bundles_post_ra>
